<compile_context>
chip_gen: v6e
topology: v6e:2x2x1
jax: 0.10.0
libtpu: 0.0.40
codegen_flags: <defaults>
</compile_context>

<pallas_src>
import jax
import jax.numpy as jnp
from jax.experimental import pallas as pl
from jax.experimental.pallas import tpu as pltpu


# --------------------------------------------------------------------------- #
# Kernels                                                                     #
# --------------------------------------------------------------------------- #
def _axis_max_kernel(pred_ref, row_ref, col_ref):
    """Per-chunk per-row maxima + running per-column maxima of raw logits.

    pred_ref : (bb, hc, W)  logits, native dtype (no full-tile upcast)
    row_ref  : (bb, hc, 1)  f32, this chunk's per-row maxima
    col_ref  : (bb, 1, W)   f32, running per-column maxima (resident across h)
    """
    h = pl.program_id(1)
    x = pred_ref[...]                                            # native dtype
    row_ref[...] = jnp.max(x, axis=2, keepdims=True).astype(jnp.float32)
    col_m = jnp.max(x, axis=1, keepdims=True).astype(jnp.float32)

    @pl.when(h == 0)
    def _():
        col_ref[...] = col_m

    @pl.when(h != 0)
    def _():
        col_ref[...] = jnp.maximum(col_ref[...], col_m)


def _mask_kernel(pred_ref, scale_ref, mask_ref):
    """Normalized mask: sigmoid(logit) * (255 / max); bf16 output store."""
    y = jax.nn.sigmoid(pred_ref[...].astype(jnp.float32))
    mask_ref[...] = (y * scale_ref[...]).astype(mask_ref.dtype)


# --------------------------------------------------------------------------- #
# Tiling helpers (generation aware)                                           #
# --------------------------------------------------------------------------- #
def _vmem_capacity_bytes():
    try:
        info = pltpu.get_tpu_info()
        cap = getattr(info, "vmem_capacity_bytes", None)
        if cap:
            return int(cap)
    except Exception:
        pass
    return 64 << 20          # conservative fallback (v7x per-TensorCore VMEM)


def _pick_h_chunk(H, W, bytes_per_elem, budget, sub):
    """Largest H chunk (multiple of `sub`, dividing H, or H itself) fitting budget."""
    cands = sorted({H} | {h for h in range(sub, H, sub) if H % h == 0}, reverse=True)
    for hc in cands:
        if hc * W * bytes_per_elem <= budget:
            return hc
    return cands[-1]


def _pick_block_b(B, bytes_per_image_block, budget, max_block_b):
    for d in range(min(B, max_block_b), 0, -1):
        if B % d == 0 and d * bytes_per_image_block <= budget:
            return d
    return 1


# --------------------------------------------------------------------------- #
# Tiny per-image math hoisted to plain JAX (O(B*(H+W+N)))                     #
# --------------------------------------------------------------------------- #
def _bbox_from_axis_maxima(row_p, col_p):
    """row_p: (B,H) per-row max prob, col_p: (B,W) per-col max prob -> bbox."""
    B, H = row_p.shape
    W = col_p.shape[1]
    y_max = jnp.max(col_p, axis=1, keepdims=True)                 # (B,1)
    thr = 0.5 * jnp.maximum(y_max, 1e-7)                          # y255 > 127.5
    big = jnp.float32(1e9)
    cols = jnp.arange(W, dtype=jnp.float32)[None, :]
    rows = jnp.arange(H, dtype=jnp.float32)[None, :]
    col_hit = col_p > thr
    row_hit = row_p > thr
    anyp = jnp.any(col_hit, axis=1)
    x0 = jnp.min(jnp.where(col_hit, cols, big), axis=1)
    x1 = jnp.max(jnp.where(col_hit, cols, -big), axis=1) + 1.0
    y0 = jnp.min(jnp.where(row_hit, rows, big), axis=1)
    y1 = jnp.max(jnp.where(row_hit, rows, -big), axis=1) + 1.0
    z = jnp.zeros_like(x0)
    x0 = jnp.where(anyp, x0, z)
    x1 = jnp.where(anyp, x1, z)
    y0 = jnp.where(anyp, y0, z)
    y1 = jnp.where(anyp, y1, z)
    pv = jnp.where(anyp, 1.0, 0.0)
    return x0, y0, x1, y1, pv, y_max[:, 0]


def _precision_recall(px0, py0, px1, py1, pv, tgt_boxes, tgt_valid, iou_threshold):
    """One predicted box per image vs padded targets (B,N,4) + validity (B,N)."""
    tx0, ty0, tx1, ty1 = (tgt_boxes[..., k] for k in range(4))    # each (B,N)
    ix0 = jnp.maximum(px0[:, None], tx0)
    iy0 = jnp.maximum(py0[:, None], ty0)
    ix1 = jnp.minimum(px1[:, None], tx1)
    iy1 = jnp.minimum(py1[:, None], ty1)
    inter = jnp.maximum(ix1 - ix0, 0.0) * jnp.maximum(iy1 - iy0, 0.0)
    pa = jnp.maximum(px1 - px0, 0.0) * jnp.maximum(py1 - py0, 0.0)     # (B,)
    ta = jnp.maximum(tx1 - tx0, 0.0) * jnp.maximum(ty1 - ty0, 0.0)     # (B,N)
    union = pa[:, None] + ta - inter
    iou = inter / jnp.maximum(union, 1e-7)
    valid = pv[:, None] * tgt_valid
    match = jnp.where((iou > iou_threshold) & (valid > 0.5), 1.0, 0.0)
    tp_pred = jnp.max(match, axis=1) * pv
    n_tgt = jnp.sum(tgt_valid, axis=1)
    tp_tgt = jnp.sum(match * tgt_valid, axis=1)
    precision = jnp.where(pv > 0.0, tp_pred / jnp.maximum(pv, 1.0), 0.0)
    recall = jnp.where(n_tgt > 0.0, tp_tgt / jnp.maximum(n_tgt, 1.0), 0.0)
    # TODO(synk): one predicted box may match several targets (one-to-many);
    # the reference's utils.calculate_precision_recall matching policy is unknown.
    return precision, recall


# --------------------------------------------------------------------------- #
# Wrapper                                                                     #
# --------------------------------------------------------------------------- #
def box_validation_loss(prediction, target_bboxes, target_valid,
                        iou_threshold=0.1, return_masks=False, h_chunk=None):
    """prediction: (B, 1, H, W) logits (NCHW, native dtype).
    target_bboxes: (B, N, 4) xyxy.  target_valid: (B, 1, N) in {0, 1}."""
    B, C, H, W = prediction.shape
    assert C == 1, "single-channel masks (grayscale) as in the reference module"

    pred_bhw = prediction[:, 0, :, :]                             # native dtype
    bpe = jnp.dtype(prediction.dtype).itemsize

    vmem_cap = _vmem_capacity_bytes()
    budget = vmem_cap // 8          # per input block (double-buffered -> cap/4)
    vmem_hi = vmem_cap * 3 // 4     # never request more than 3/4 of physical VMEM

    sub = max(8, 32 // max(bpe, 1))                               # sublane granule
    if h_chunk is not None and H % h_chunk == 0 and (h_chunk % sub == 0 or h_chunk == H):
        hc = h_chunk
    else:
        hc = _pick_h_chunk(H, W, bpe, budget, sub)
    max_bb = max(1, B // 2) if B >= 2 else 1    # keep >=2 batch steps (v7x: 2 TCs)
    bb = _pick_block_b(B, hc * W * bpe, budget, max_bb)
    nb, nh = B // bb, H // hc

    need = 2 * bb * hc * W * bpe + 2 * bb * (hc + W) * 4 + (2 << 20)
    vmem_limit = int(min(vmem_hi, max(32 << 20, need)))

    row_out, col_out = pl.pallas_call(
        _axis_max_kernel,
        out_shape=(jax.ShapeDtypeStruct((B, H, 1), jnp.float32),
                   jax.ShapeDtypeStruct((B, 1, W), jnp.float32)),
        grid=(nb, nh),
        in_specs=[pl.BlockSpec((bb, hc, W), lambda b, h: (b, h, 0))],
        out_specs=(pl.BlockSpec((bb, hc, 1), lambda b, h: (b, h, 0)),
                   pl.BlockSpec((bb, 1, W), lambda b, h: (b, 0, 0))),
        compiler_params=pltpu.CompilerParams(
            dimension_semantics=("parallel", "arbitrary"),
            vmem_limit_bytes=vmem_limit),
    )(pred_bhw)

    # Sigmoid only on the reduced maxima (monotone => identical thresholding
    # decisions to the per-pixel sigmoid of the reference).
    row_p = jax.nn.sigmoid(row_out[:, :, 0])                      # (B, H)
    col_p = jax.nn.sigmoid(col_out[:, 0, :])                      # (B, W)
    x0, y0, x1, y1, pv, y_max = _bbox_from_axis_maxima(row_p, col_p)

    tb = target_bboxes.astype(jnp.float32)                        # (B, N, 4)
    tv = target_valid.astype(jnp.float32).reshape(B, -1)          # (B, N)
    precision_i, recall_i = _precision_recall(x0, y0, x1, y1, pv, tb, tv, iou_threshold)
    precision = jnp.mean(precision_i)
    recall = jnp.mean(recall_i)
    loss = 1.0 - (3.0 * precision + recall) / 4.0
    # TODO(synk): self.log / self.log_image / cv2 visualization are host-side
    # side effects with no Pallas equivalent; only the returned loss is computed.
    # TODO(synk): cv2-contour mask_2_bbox can emit multiple boxes per image;
    # simplified to one threshold-derived bbox per image.

    norm_masks = None
    if return_masks:
        # torch_to_numpy-style normalized mask.  bf16 store halves HBM writeback.
        # TODO(synk): reference casts to uint8; bf16 kept for safe TPU tiling.
        scale = (255.0 / jnp.maximum(y_max, 1e-7)).reshape(B, 1, 1).astype(jnp.float32)
        hcm = _pick_h_chunk(H, W, bpe + 2, budget, 16)            # bf16 out packing
        bbm = _pick_block_b(B, hcm * W * (bpe + 2), budget, max_bb)
        nbm, nhm = B // bbm, H // hcm
        need_m = 2 * bbm * hcm * W * (bpe + 2) + (2 << 20)
        vmem_limit_m = int(min(vmem_hi, max(32 << 20, need_m)))
        norm_masks = pl.pallas_call(
            _mask_kernel,
            out_shape=jax.ShapeDtypeStruct((B, H, W), jnp.bfloat16),
            grid=(nbm, nhm),
            in_specs=[pl.BlockSpec((bbm, hcm, W), lambda b, h: (b, h, 0)),
                      pl.BlockSpec((bbm, 1, 1), lambda b, h: (b, 0, 0))],
            out_specs=pl.BlockSpec((bbm, hcm, W), lambda b, h: (b, h, 0)),
            compiler_params=pltpu.CompilerParams(
                dimension_semantics=("parallel", "parallel"),
                vmem_limit_bytes=vmem_limit_m),
        )(pred_bhw, scale)

    return loss, precision, recall, norm_masks


# --------------------------------------------------------------------------- #
# Pure-JAX reference (full-image thresholding) for a correctness check        #
# --------------------------------------------------------------------------- #
def _ref_loss(logits, tb, tv, iou_thr):
    y = jax.nn.sigmoid(logits[:, 0].astype(jnp.float32))          # (B, H, W)
    B, H, W = y.shape
    ymax = jnp.max(y, axis=(1, 2), keepdims=True)
    thr = 0.5 * jnp.maximum(ymax, 1e-7)
    hit = y > thr
    rows = jnp.arange(H, dtype=jnp.float32)[None, :, None]
    cols = jnp.arange(W, dtype=jnp.float32)[None, None, :]
    big = 1e9
    x0 = jnp.min(jnp.where(hit, cols, big), axis=(1, 2))
    x1 = jnp.max(jnp.where(hit, cols, -big), axis=(1, 2)) + 1.0
    y0 = jnp.min(jnp.where(hit, rows, big), axis=(1, 2))
    y1 = jnp.max(jnp.where(hit, rows, -big), axis=(1, 2)) + 1.0
    anyp = jnp.any(hit, axis=(1, 2))
    z = jnp.zeros_like(x0)
    x0 = jnp.where(anyp, x0, z); x1 = jnp.where(anyp, x1, z)
    y0 = jnp.where(anyp, y0, z); y1 = jnp.where(anyp, y1, z)
    pv = jnp.where(anyp, 1.0, 0.0)
    p, r = _precision_recall(x0, y0, x1, y1, pv, tb.astype(jnp.float32),
                             tv.astype(jnp.float32).reshape(B, -1), iou_thr)
    return 1.0 - (3.0 * jnp.mean(p) + jnp.mean(r)) / 4.0


if __name__ == "__main__":
    key = jax.random.PRNGKey(0)
    B, C, H, W, N = 2, 1, 16, 16, 2

    # Mostly-negative logits (sigmoid ~ 0), one positive rectangular blob per image.
    logits = jax.random.normal(key, (B, C, H, W), jnp.float32) * 0.1 - 4.0
    logits = logits.at[0, 0, 4:10, 3:9].set(4.0)    # blob -> bbox (3, 4, 9, 10)
    logits = logits.at[1, 0, 8:14, 6:14].set(4.0)   # blob -> bbox (6, 8, 14, 14)

    target_bboxes = jnp.array(
        [[[3.0, 4.0, 9.0, 10.0], [0.0, 0.0, 0.0, 0.0]],
         [[6.0, 8.0, 14.0, 14.0], [1.0, 1.0, 5.0, 5.0]]], jnp.float32)
    target_valid = jnp.array([[[1.0, 0.0]], [[1.0, 1.0]]], jnp.float32)

    loss_fn = jax.jit(box_validation_loss, static_argnums=(4, 5))

    # Loss-only fast path (single H chunk per image).
    loss, precision, recall, _ = loss_fn(logits, target_bboxes, target_valid,
                                         0.1, False, None)
    jax.block_until_ready(loss)

    # H-tiled path (2 chunks, exercises the running col-max accumulator)
    # plus the normalized-mask writeback kernel.
    loss_t, prec_t, rec_t, masks = loss_fn(logits, target_bboxes, target_valid,
                                           0.1, True, 8)
    jax.block_until_ready(masks)

    ref = _ref_loss(logits, target_bboxes, target_valid, 0.1)
    assert abs(float(loss) - float(ref)) < 1e-4, (float(loss), float(ref))
    assert abs(float(loss_t) - float(ref)) < 1e-4, (float(loss_t), float(ref))
    assert masks.shape == (B, H, W) and masks.dtype == jnp.bfloat16

    print("KERNEL_OK")
</pallas_src>

<mosaic_0001>
module attributes {stable_mosaic.version = 11 : i64} {
  func.func @_axis_max_kernel(%arg0: i32, %arg1: i32, %arg2: memref<1x16x16xf32, #tpu.memory_space<vmem>>, %arg3: memref<1x16x1xf32, #tpu.memory_space<vmem>>, %arg4: memref<1x1x16xf32, #tpu.memory_space<vmem>>) attributes {dimension_semantics = [#tpu.dimension_semantics<parallel>, #tpu.dimension_semantics<arbitrary>], iteration_bounds = array<i64: 2, 1>, scalar_prefetch = 0 : i64, scratch_operands = 0 : i64, tpu.core_type = #tpu.core_type<tc>, window_params = [{transform_indices = @transform_0, window_bounds = array<i64: 1, 16, 16>}, {transform_indices = @transform_1, window_bounds = array<i64: 1, 16, 1>}, {transform_indices = @transform_2, window_bounds = array<i64: 1, 1, 16>}]} {
    %c0 = arith.constant 0 : index
    %c0_0 = arith.constant 0 : index
    %c0_1 = arith.constant 0 : index
    %0 = vector.load %arg2[%c0, %c0_0, %c0_1] : memref<1x16x16xf32, #tpu.memory_space<vmem>>, vector<1x16x16xf32>
    %cst = arith.constant dense<0xFF800000> : vector<1x16xf32>
    %1 = vector.multi_reduction <maximumf>, %0, %cst [2] : vector<1x16x16xf32> to vector<1x16xf32>
    %2 = vector.shape_cast %1 : vector<1x16xf32> to vector<1x16x1xf32>
    %c0_2 = arith.constant 0 : index
    %c0_3 = arith.constant 0 : index
    %c0_4 = arith.constant 0 : index
    %3 = vector.load %arg3[%c0_2, %c0_3, %c0_4] : memref<1x16x1xf32, #tpu.memory_space<vmem>>, vector<1x16x1xf32>
    tpu.vector_store %arg3[%c0_2, %c0_3, %c0_4], %2 {strides = array<i32>} : memref<1x16x1xf32, #tpu.memory_space<vmem>>, vector<1x16x1xf32>,
    %cst_5 = arith.constant dense<0xFF800000> : vector<1x16xf32>
    %4 = vector.multi_reduction <maximumf>, %0, %cst_5 [1] : vector<1x16x16xf32> to vector<1x16xf32>
    %5 = vector.shape_cast %4 : vector<1x16xf32> to vector<1x1x16xf32>
    %c0_i32 = arith.constant 0 : i32
    %6 = arith.cmpi eq, %arg1, %c0_i32 : i32
    %7 = arith.extui %6 : i1 to i32
    %c0_i32_6 = arith.constant 0 : i32
    %8 = arith.cmpi ne, %7, %c0_i32_6 : i32
    scf.if %8 {
      %c0_9 = arith.constant 0 : index
      %c0_10 = arith.constant 0 : index
      %c0_11 = arith.constant 0 : index
      %12 = vector.load %arg4[%c0_9, %c0_10, %c0_11] : memref<1x1x16xf32, #tpu.memory_space<vmem>>, vector<1x1x16xf32>
      tpu.vector_store %arg4[%c0_9, %c0_10, %c0_11], %5 {strides = array<i32>} : memref<1x1x16xf32, #tpu.memory_space<vmem>>, vector<1x1x16xf32>,
    } else {
    }
    %c0_i32_7 = arith.constant 0 : i32
    %9 = arith.cmpi ne, %arg1, %c0_i32_7 : i32
    %10 = arith.extui %9 : i1 to i32
    %c0_i32_8 = arith.constant 0 : i32
    %11 = arith.cmpi ne, %10, %c0_i32_8 : i32
    scf.if %11 {
      %c0_9 = arith.constant 0 : index
      %c0_10 = arith.constant 0 : index
      %c0_11 = arith.constant 0 : index
      %12 = vector.load %arg4[%c0_9, %c0_10, %c0_11] : memref<1x1x16xf32, #tpu.memory_space<vmem>>, vector<1x1x16xf32>
      %13 = arith.maximumf %12, %5 : vector<1x1x16xf32>
      %c0_12 = arith.constant 0 : index
      %c0_13 = arith.constant 0 : index
      %c0_14 = arith.constant 0 : index
      %14 = vector.load %arg4[%c0_12, %c0_13, %c0_14] : memref<1x1x16xf32, #tpu.memory_space<vmem>>, vector<1x1x16xf32>
      tpu.vector_store %arg4[%c0_12, %c0_13, %c0_14], %13 {strides = array<i32>} : memref<1x1x16xf32, #tpu.memory_space<vmem>>, vector<1x1x16xf32>,
    } else {
    }
    return
  }
  func.func @transform_0(%arg0: i32, %arg1: i32) -> (i32, i32, i32) {
    %c0_i32 = arith.constant 0 : i32
    %c0_i32_0 = arith.constant 0 : i32
    return %arg0, %arg1, %c0_i32 : i32, i32, i32
  }
  func.func @transform_1(%arg0: i32, %arg1: i32) -> (i32, i32, i32) {
    %c0_i32 = arith.constant 0 : i32
    %c0_i32_0 = arith.constant 0 : i32
    return %arg0, %arg1, %c0_i32 : i32, i32, i32
  }
  func.func @transform_2(%arg0: i32, %arg1: i32) -> (i32, i32, i32) {
    %c0_i32 = arith.constant 0 : i32
    %c0_i32_0 = arith.constant 0 : i32
    %c0_i32_1 = arith.constant 0 : i32
    return %arg0, %c0_i32, %c0_i32_0 : i32, i32, i32
  }
}

</mosaic_0001>

<bundles_post_ra>
// kernel: box_validation_loss.1
= control target key start
LH: loop header
LB: loop body
LE: loop exit
PB: predicated region body
PF: predicated region fallthrough
CT: control target
= control target key end

     0   :  { %8 = vsyncpa [#allocation3], 0  ;;  %s623_s0 = inlined_call_operand.hbm [shape: f32[2,16,16], index: 0, kind: input, shape index: {}]   ;;  %s624_s1 = inlined_call_operand.vmem [shape: f32[2,16,1], index: 1, kind: output, shape index: {0}]   ;;  %s625_s2 = inlined_call_operand.vmem [shape: f32[2,1,16], index: 2, kind: output, shape index: {1}]  }
   0x1   :  { %10 = vsyncpa [#allocation3 + $0x1], 0  ;;  %s524_s9 = smov 0   ;;  %s526_s10 = smov 0  }
   0x2   :  { %s528_s11 = smov 0   ;;  %s530_s12 = smov 0  }
   0x3   :  { %s532_s13 = smov 0   ;;  %s534_s14 = smov 0  }
   0x4 LB: > { %s354_s15 = sadd.s32 4294967295, %s504_s14   ;;  %s28_s16 = sadd.s32 1, %s500_s13  ;;  %s504_s14 = sphi %s534_s14, %s16_s14   ;;  %s500_s13 = sphi %s532_s13, %s633_s13   ;;  %s496_s12 = sphi %s530_s12, %s632_s12   ;;  %s492_s11 = sphi %s528_s11, %s631_s11   ;;  %s488_s10 = sphi %s526_s10, %s630_s10   ;;  %s484_s9 = sphi %s524_s9, %s629_s9  }
   0x5   : > { %p30_p0 = scmp.ge.s32.totalorder %s28_s16, 2  ;;  %s37_s17 = sadd.s32 1, %s492_s11 }
   0x6   : > { %p44_p1 = scmp.ne.s32.totalorder %s492_s11, %s488_s10  ;;  %p45_p2 = scmp.eq.s32.totalorder %s504_s14, 0 }
   0x7   : > { %s635_s16 = smov (%p30_p0, %s28_s16), 0  ;;  %p50_p4 = scmp.ne.s32.totalorder %s488_s10, %s484_s9 }
   0x8   : > { %p560_p3 = por %p45_p2, %p44_p1  ;;  %s32_s19 = ssub.s32 %s500_s13, %s635_s16 }
   0x9   : > { %p51_p5 = scmp.eq.s32.totalorder %s354_s15, 0  ;;  %p35_p6 = scmp.eq.s32.totalorder %s32_s19, 0 }
   0xa   : > { %p375_p8 = scmp.lt.s32.totalorder %s504_s14, 2  ;;  %s128_s22 = sand.u32 1, %s492_s11  }
   0xb   : > { %p567_p7 = por %p51_p5, %p50_p4  ;;  %s367_s23 = sshll.u32 %s500_s13, 8 }
   0xc   : > { %s573_s21 = scalar_select %p35_p6, %s492_s11, %s37_s17  }
   0xd   : > { %s358_s24 = sshll.u32 %s128_s22, 4  ;;  %s140_s27 = scalar_lea.hbm %s623_s0, %s367_s23 }
   0xe   : > { %s132_s28 = scalar_lea.vmem [#allocation2], %s358_s24  ;;  %p582_p9 = pnand %p375_p8, %p560_p3 }
   0xf   : > { %s141_s29 = sshll.u32 %s132_s28, 4  ;;  %s129_s3 = scalar_lea.sflag [#allocation3], %s128_s22  ;;  %s142_s29 = int_to_ptr.vmem [resolvable:$true] %s141_s29 }
  0x10   : > { %p428_p10 = pneg %p582_p9  ;;  %s439_s4 = scalar_lea.vmem %s142_s29, 256 }
  0x11   : > { %p440_p11 = scmp.ne.s32.totalorder %s142_s29, %s439_s4  ;;  %s506_s5 = smov [#allocation2]  }
  0x12   : > { %s444_s6 = sshll.u32 %s506_s5, 4  ;;  %s445_s6 = int_to_ptr.vmem [resolvable:$false] %s444_s6 }
  0x13   : > { %p442_p12 = pnand %p440_p11, %p428_p10  ;;  %s446_s7 = scalar_lea.vmem %s445_s6, 512 }
  0x14   : > { %p447_p0 = scmp.lt.s32.totalorder %s142_s29, %s445_s6  ;;  %p448_p1 = scmp.lt.s32.totalorder %s446_s7, %s439_s4 }
  0x15   : > { %p443_p13 = pneg %p442_p12 }
  0x16   : > { %p449_p2 = por %p448_p1, %p447_p0 }
  0x18   : > { %p450_p3 = pnand %p449_p2, %p443_p13 }
  0x1a   : > { %453 = shalt.err (!%p450_p3)
}
  0x1b   : > { %s507_s8 = smov 128   ;;  %s508_s9 = smov 8  }
  0x1c   : > { %374 = dma.hbm_to_vmem [thread:$0]  (!%p582_p9), %s140_s27, 256, %s142_s29, %s129_s3, %s507_s8, %s507_s8, %s508_s9  }
  0x1d   : > { %p361_p4 = scmp.ge.s32.totalorder %s504_s14, 1  ;;  %p149_p5 = scmp.lt.s32.totalorder %s504_s14, 3 }
  0x1f   : > { %p150_p6 = pnand %p361_p4, %p149_p5 }
  0x20   : > { %s155_s15 = sand.u32 (!%p150_p6), 1, %s488_s10  }
  0x21   : > { %153 = sbr.rel (%p150_p6) target bundleno = 184 (0xb8), region = 24  ;;  %s362_s17 = sshll.u32 (!%p150_p6), %s155_s15, 4 }
  0x22   : > { %s156_s18 = scalar_lea.sflag (!%p150_p6), [#allocation3], %s155_s15  ;;  %s159_s19 = scalar_lea.vmem (!%p150_p6), [#allocation2], %s362_s17 }
  0x26   : > { %479 = dma.done.wait (%p567_p7), %s156_s18, 256  }
  0x27   : > { %481 = vsyncadd (%p567_p7), %s156_s18, 4294967040  ;;  %vm203_vm0 = vcmask 130048   ;;  %v201_v0 = vld [vmem:[%s159_s19] sm:$0xff]  ;;  %v202_v1 = vld [vmem:[%s159_s19 + $0x8] sm:$0xff]  ;;  %p189_p8 = scmp.lt.s32.totalorder %s496_s12, 1  ;;  %vm224_vm1 = vcmask 122880  }
  0x28   : > { %v204_v2 = vsel %vm203_vm0, %v201_v0, -inf  ;;  %v207_v3 = vsel %vm203_vm0, %v202_v1, -inf  ;;  %vm210_vm2 = vcmask 7168  }
  0x29   : > { %205 = vmax.xlane.f32.xlu0 %v204_v2  ;;  %v213_v4 = vmax.f32 %v204_v2, %v207_v3  ;;  %s637_s12 = smov (!%p189_p8, %s496_s12), 1 }
  0x2a   : > { %s200_s23 = scalar_lea.vmem %s625_s2, %s637_s12  ;;  %s368_s24 = sshll.u32 %s637_s12, 4 }
  0x2b   : > { %v214_v5 = vrot.slane %v213_v4, 4  ;;  %s196_s27 = scalar_lea.vmem %s624_s1, %s368_s24 }
  0x2d   : > { %208 = vmax.xlane.f32.xlu0 %v207_v3  ;;  %v215_v6 = vmax.f32 %v213_v4, %v214_v5 }
  0x2f   : > { %v216_v7 = vrot.slane %v215_v6, 2 }
  0x31   : > { %v217_v8 = vmax.f32 %v215_v6, %v216_v7 }
  0x33   : > { %v218_v9 = vrot.slane %v217_v8, 1 }
  0x35   : > { %v219_v10 = vmax.f32 %v217_v8, %v218_v9 }
  0x37   : > { %225 = vst.msk [vmem:[%s200_s23] sm:$0x1] %vm224_vm1, %v219_v10 }
  0xb2   : > { %v206_v11 = vpop.xlane.xlu0 %205 }
  0xb3   : > { %211 = vst.msk [vmem:[%s196_s27] sm:$0xff] %vm210_vm2, %v206_v11 }
  0xb6   : > { %v209_v12 = vpop.xlane.xlu0 %208 }
  0xb7   : > { %212 = vst.msk [vmem:[%s196_s27 + $0x8] sm:$0xff] %vm210_vm2, %v209_v12 }
  0xb8 PF: > { %s16_s14 = sadd.s32 1, %s504_s14   ;;  %s629_s9 = smov %s488_s10 }
  0xb9   : > { %p13_p7 = scmp.ge.s32.totalorder %s16_s14, 4   ;;  %s630_s10 = smov %s492_s11 }
  0xba   : > { %s631_s11 = smov %s573_s21  ;;  %s632_s12 = smov %s500_s13 }
  0xbb   : > { %s633_s13 = smov %s635_s16  ;;  %15 = sbr.rel (!%p13_p7) target bundleno = 4 (0x4), region = 84 }
  0xc0   :  { %276 = vsyncpa [#allocation3], 1 }
  0xc1   :  { %278 = vsyncpa [#allocation3 + $0x1], 1 }

</bundles_post_ra>
